<compile_context>
chip_gen: v7x
topology: tpu7x:2x2x1
jax: 0.10.0
libtpu: 0.0.40
codegen_flags: <defaults>
</compile_context>

<pallas_src>
import math

import numpy as np
import jax
import jax.numpy as jnp
from jax.experimental import pallas as pl
from jax.experimental.pallas import tpu as pltpu


def _idwt_wide_kernel(ll_ref, lh_ref, hl_ref, hh_ref,
                      kll_ref, klh_ref, khl_ref, khh_ref, rmask_ref,
                      o_ref, y_scr):
    """One grid step: tn whole images, one (M, W) slab per band (M = tn*H).

    o_ref is the lane-packed (M, 4W) view of the same images' (2H, 2W) outputs:
    out[t, 2i+p, c] == o_ref[t*H + i, p*2W + c], so the even/odd output-row pair
    of source row i occupies the low/high 2W lanes of one slab row and the whole
    step ends in a single dense store.
    """
    M, W4 = o_ref.shape
    W2 = W4 // 2
    f32 = jnp.float32

    # y[:, :2W] = "even" output rows (source row i)
    # y[:, 2W:] = "odd"  output rows before the row shift (source row i)
    y = (jnp.dot(ll_ref[...], kll_ref[...], preferred_element_type=f32)
         + jnp.dot(lh_ref[...], klh_ref[...], preferred_element_type=f32)
         + jnp.dot(hl_ref[...], khl_ref[...], preferred_element_type=f32)
         + jnp.dot(hh_ref[...], khh_ref[...], preferred_element_type=f32))

    # Odd output row 2i+1 needs source row min(i+1, H-1): shift y by one slab
    # row through VMEM scratch (y1[r] = y[r+1]).  y1[M-1] reads an
    # uninitialised scratch row, but row M-1 is always an image-last row, where
    # the reflect clamp selects y, so that value is never used.
    y_scr[pl.ds(0, M), :] = y
    y1 = y_scr[pl.ds(1, M), :]

    lane = jax.lax.broadcasted_iota(jnp.int32, (M, W4), 1)
    keep = (lane < W2) | (rmask_ref[...] > 0.5)   # even half, or clamp row
    o_ref[...] = jnp.where(keep, y, y1).astype(o_ref.dtype)


def _wide_haar_constants(W):
    """(W, 4W) per-band synthesis matrices (column interleave + reflect clamp +
    Haar signs + 0.5 scale baked in)."""
    c = np.arange(2 * W)
    src = np.minimum((c + 1) // 2, W - 1)          # reflect-clamped source column
    cp = np.zeros((W, 2 * W), np.float32)
    cp[src, c] = 1.0                               # column interleave / clamp
    cm = cp * ((-1.0) ** c)[None, :]               # ... with (-1)^col sign
    # Even output rows (left 2W lanes):  0.5*((LL - LH)@cp + (HL + HH)@cm)
    # Odd  output rows (right 2W lanes): 0.5*((LL + LH)@cp + (HL - HH)@cm)
    kll = 0.5 * np.concatenate([cp, cp], axis=1)
    klh = 0.5 * np.concatenate([-cp, cp], axis=1)
    khl = 0.5 * np.concatenate([cm, cm], axis=1)
    khh = 0.5 * np.concatenate([cm, -cm], axis=1)
    return kll, klh, khl, khh


def _pick_images_per_step(n, h, w, itemsize, pipelined_budget_bytes=8 << 20):
    """Whole images per grid step.

    - Size the double-buffered HBM<->VMEM slabs (4 input planes + the 4x larger
      output plane) to a few MiB so each step rides the HBM roofline instead of
      the ~0.35us per-step overhead (review items 1/8).
    - Keep >= 2 grid steps when possible so the 'parallel' axis shards across
      both v7x TensorCores (item 2).
    - Respect the Mosaic (8,128) rule on the second-minor block dim.
    """
    per_image = 2 * (4 * h * w + 4 * h * w) * itemsize   # double-buffered in+out
    tn = max(1, pipelined_budget_bytes // max(per_image, 1))
    if n >= 2:
        tn = min(tn, (n + 1) // 2)        # at least 2 grid steps for v7x megacore
    tn = min(tn, n)
    q = 8 // math.gcd(h, 8)               # need (tn*h) % 8 == 0 unless block == array
    if tn < n:
        tn = max(q, (tn // q) * q)
        tn = min(tn, n)
    return int(tn)


def idwt_haar_2d(LL, LH, HL, HH):
    """Matches idwtHaar_2d(mode='reflect').forward(LL, LH, HL, HH) (NCHW)."""
    B, C, H, W = LL.shape
    N = B * C
    W4 = 4 * W
    dt = LL.dtype

    tn = _pick_images_per_step(N, H, W, dt.itemsize)
    M = tn * H

    # Host-built constants (exact 0 / +-0.5 / +-1 selection values).
    kll, klh, khl, khh = (jnp.asarray(k, dtype=dt) for k in _wide_haar_constants(W))
    rmask_np = np.zeros((M, 1), np.float32)
    rmask_np[H - 1::H, 0] = 1.0            # per-image last row -> reflect clamp
    rmask = jnp.asarray(rmask_np)

    # Free (contiguous) reshapes: per-band (N*H, W) slabs in, lane-packed
    # (N*H, 4W) output view out -- no HBM staging passes.
    ll = LL.reshape(N * H, W)
    lh = LH.reshape(N * H, W)
    hl = HL.reshape(N * H, W)
    hh = HH.reshape(N * H, W)

    band_spec = pl.BlockSpec((M, W), lambda g: (g, 0))
    const_spec = pl.BlockSpec((W, W4), lambda g: (0, 0))   # resident across steps
    mask_spec = pl.BlockSpec((M, 1), lambda g: (0, 0))     # resident across steps

    out = pl.pallas_call(
        _idwt_wide_kernel,
        out_shape=jax.ShapeDtypeStruct((N * H, W4), dt),
        grid_spec=pltpu.PrefetchScalarGridSpec(
            num_scalar_prefetch=0,
            grid=(pl.cdiv(N, tn),),        # partial last block for awkward N
            in_specs=[band_spec, band_spec, band_spec, band_spec,
                      const_spec, const_spec, const_spec, const_spec,
                      mask_spec],
            out_specs=pl.BlockSpec((M, W4), lambda g: (g, 0)),
            scratch_shapes=[pltpu.VMEM((M + 8, W4), jnp.float32)]),
        compiler_params=pltpu.CompilerParams(
            dimension_semantics=("parallel",),
            vmem_limit_bytes=32 * 1024 * 1024),
    )(ll, lh, hl, hh, kll, klh, khl, khh, rmask)
    return out.reshape(B, C, 2 * H, 2 * W)


# ----------------------------------------------------------------------------
# Pure-JAX reference mirroring the PyTorch forward exactly:
# conv_transpose2d(1x1 ones, stride 2) -> reflect pads -> four 2x2 convs.
_IHAAR = np.asarray(
    [
        [[ 1.0,  1.0], [ 1.0,  1.0]],   # iLL
        [[-1.0, -1.0], [ 1.0,  1.0]],   # iLH
        [[ 1.0, -1.0], [ 1.0, -1.0]],   # iHL
        [[ 1.0, -1.0], [-1.0,  1.0]],   # iHH
    ],
    dtype=np.float32,
) * 0.5


def _reference(LL, LH, HL, HH):
    B, C, H, W = LL.shape
    x = jnp.concatenate([LL, LH, HL, HH], axis=1)
    xp = jnp.zeros((B, 4 * C, 2 * H, 2 * W), x.dtype).at[:, :, ::2, ::2].set(x)
    xpp = jnp.pad(xp, ((0, 0), (0, 0), (0, 1), (0, 1)), mode="reflect")
    k = jnp.asarray(_IHAAR)
    LL2, LH2, HL2, HH2 = jnp.split(xpp, 4, axis=1)

    def conv2x2(a, kk):
        return (kk[0, 0] * a[..., :-1, :-1] + kk[0, 1] * a[..., :-1, 1:]
                + kk[1, 0] * a[..., 1:, :-1] + kk[1, 1] * a[..., 1:, 1:])

    return (conv2x2(LL2, k[0]) + conv2x2(LH2, k[1])
            + conv2x2(HL2, k[2]) + conv2x2(HH2, k[3]))


if __name__ == "__main__":
    key = jax.random.PRNGKey(0)

    def check(shape):
        k1, k2, k3, k4 = jax.random.split(
            jax.random.fold_in(key, shape[0] * 1000 + shape[2]), 4)
        LL = jax.random.normal(k1, shape, dtype=jnp.float32)
        LH = jax.random.normal(k2, shape, dtype=jnp.float32)
        HL = jax.random.normal(k3, shape, dtype=jnp.float32)
        HH = jax.random.normal(k4, shape, dtype=jnp.float32)

        out = jax.block_until_ready(jax.jit(idwt_haar_2d)(LL, LH, HL, HH))
        assert out.shape == (shape[0], shape[1], 2 * shape[2], 2 * shape[3]), out.shape

        ref = _reference(LL, LH, HL, HH)
        np.testing.assert_allclose(np.asarray(out), np.asarray(ref),
                                   rtol=1e-5, atol=1e-5)

    check((2, 4, 16, 16))   # N=8  -> tn=4,  grid=(2,): both v7x cores busy
    check((2, 24, 8, 8))    # N=48 -> tn=24, grid=(2,)
    print("KERNEL_OK")
</pallas_src>

<mosaic_0001>
module attributes {stable_mosaic.version = 11 : i64} {
  func.func @_idwt_wide_kernel(%arg0: i32, %arg1: memref<64x16xf32, #tpu.memory_space<vmem>>, %arg2: memref<64x16xf32, #tpu.memory_space<vmem>>, %arg3: memref<64x16xf32, #tpu.memory_space<vmem>>, %arg4: memref<64x16xf32, #tpu.memory_space<vmem>>, %arg5: memref<16x64xf32, #tpu.memory_space<vmem>>, %arg6: memref<16x64xf32, #tpu.memory_space<vmem>>, %arg7: memref<16x64xf32, #tpu.memory_space<vmem>>, %arg8: memref<16x64xf32, #tpu.memory_space<vmem>>, %arg9: memref<64x1xf32, #tpu.memory_space<vmem>>, %arg10: memref<64x64xf32, #tpu.memory_space<vmem>>, %arg11: memref<72x64xf32, #tpu.memory_space<vmem>>) attributes {dimension_semantics = [#tpu.dimension_semantics<parallel>], iteration_bounds = array<i64: 2>, scalar_prefetch = 0 : i64, scratch_operands = 1 : i64, tpu.core_type = #tpu.core_type<tc>, window_params = [{transform_indices = @transform_0, window_bounds = array<i64: 64, 16>}, {transform_indices = @transform_1, window_bounds = array<i64: 64, 16>}, {transform_indices = @transform_2, window_bounds = array<i64: 64, 16>}, {transform_indices = @transform_3, window_bounds = array<i64: 64, 16>}, {pipeline_mode = #tpu.pipeline_mode<synchronous>, transform_indices = @transform_4, window_bounds = array<i64: 16, 64>}, {pipeline_mode = #tpu.pipeline_mode<synchronous>, transform_indices = @transform_5, window_bounds = array<i64: 16, 64>}, {pipeline_mode = #tpu.pipeline_mode<synchronous>, transform_indices = @transform_6, window_bounds = array<i64: 16, 64>}, {pipeline_mode = #tpu.pipeline_mode<synchronous>, transform_indices = @transform_7, window_bounds = array<i64: 16, 64>}, {pipeline_mode = #tpu.pipeline_mode<synchronous>, transform_indices = @transform_8, window_bounds = array<i64: 64, 1>}, {transform_indices = @transform_9, window_bounds = array<i64: 64, 64>}]} {
    %c0 = arith.constant 0 : index
    %c0_0 = arith.constant 0 : index
    %0 = vector.load %arg1[%c0, %c0_0] : memref<64x16xf32, #tpu.memory_space<vmem>>, vector<64x16xf32>
    %c0_1 = arith.constant 0 : index
    %c0_2 = arith.constant 0 : index
    %1 = vector.load %arg5[%c0_1, %c0_2] : memref<16x64xf32, #tpu.memory_space<vmem>>, vector<16x64xf32>
    %cst = arith.constant dense<0.000000e+00> : vector<64x64xf32>
    %2 = tpu.matmul %0, %1, %cst {dimension_numbers = #tpu.dot_dimension_numbers<[1], [0], [0], [1], [0, 0, 1, 1], [], []>} : vector<64x16xf32>, vector<16x64xf32>, vector<64x64xf32> -> vector<64x64xf32>
    %c0_3 = arith.constant 0 : index
    %c0_4 = arith.constant 0 : index
    %3 = vector.load %arg2[%c0_3, %c0_4] : memref<64x16xf32, #tpu.memory_space<vmem>>, vector<64x16xf32>
    %c0_5 = arith.constant 0 : index
    %c0_6 = arith.constant 0 : index
    %4 = vector.load %arg6[%c0_5, %c0_6] : memref<16x64xf32, #tpu.memory_space<vmem>>, vector<16x64xf32>
    %cst_7 = arith.constant dense<0.000000e+00> : vector<64x64xf32>
    %5 = tpu.matmul %3, %4, %cst_7 {dimension_numbers = #tpu.dot_dimension_numbers<[1], [0], [0], [1], [0, 0, 1, 1], [], []>} : vector<64x16xf32>, vector<16x64xf32>, vector<64x64xf32> -> vector<64x64xf32>
    %6 = arith.addf %2, %5 : vector<64x64xf32>
    %c0_8 = arith.constant 0 : index
    %c0_9 = arith.constant 0 : index
    %7 = vector.load %arg3[%c0_8, %c0_9] : memref<64x16xf32, #tpu.memory_space<vmem>>, vector<64x16xf32>
    %c0_10 = arith.constant 0 : index
    %c0_11 = arith.constant 0 : index
    %8 = vector.load %arg7[%c0_10, %c0_11] : memref<16x64xf32, #tpu.memory_space<vmem>>, vector<16x64xf32>
    %cst_12 = arith.constant dense<0.000000e+00> : vector<64x64xf32>
    %9 = tpu.matmul %7, %8, %cst_12 {dimension_numbers = #tpu.dot_dimension_numbers<[1], [0], [0], [1], [0, 0, 1, 1], [], []>} : vector<64x16xf32>, vector<16x64xf32>, vector<64x64xf32> -> vector<64x64xf32>
    %10 = arith.addf %6, %9 : vector<64x64xf32>
    %c0_13 = arith.constant 0 : index
    %c0_14 = arith.constant 0 : index
    %11 = vector.load %arg4[%c0_13, %c0_14] : memref<64x16xf32, #tpu.memory_space<vmem>>, vector<64x16xf32>
    %c0_15 = arith.constant 0 : index
    %c0_16 = arith.constant 0 : index
    %12 = vector.load %arg8[%c0_15, %c0_16] : memref<16x64xf32, #tpu.memory_space<vmem>>, vector<16x64xf32>
    %cst_17 = arith.constant dense<0.000000e+00> : vector<64x64xf32>
    %13 = tpu.matmul %11, %12, %cst_17 {dimension_numbers = #tpu.dot_dimension_numbers<[1], [0], [0], [1], [0, 0, 1, 1], [], []>} : vector<64x16xf32>, vector<16x64xf32>, vector<64x64xf32> -> vector<64x64xf32>
    %14 = arith.addf %10, %13 : vector<64x64xf32>
    %c0_18 = arith.constant 0 : index
    %c0_19 = arith.constant 0 : index
    %15 = vector.load %arg11[%c0_18, %c0_19] : memref<72x64xf32, #tpu.memory_space<vmem>>, vector<64x64xf32>
    tpu.vector_store %arg11[%c0_18, %c0_19], %14 {strides = array<i32>} : memref<72x64xf32, #tpu.memory_space<vmem>>, vector<64x64xf32>,
    %c1 = arith.constant 1 : index
    %c0_20 = arith.constant 0 : index
    %16 = vector.load %arg11[%c1, %c0_20] : memref<72x64xf32, #tpu.memory_space<vmem>>, vector<64x64xf32>
    %17 = tpu.iota {dimensions = array<i32: 1>} : vector<64x64xi32>
    %c32_i32 = arith.constant 32 : i32
    %18 = vector.broadcast %c32_i32 : i32 to vector<64x64xi32>
    %19 = arith.cmpi slt, %17, %18 : vector<64x64xi32>
    %c0_21 = arith.constant 0 : index
    %c0_22 = arith.constant 0 : index
    %20 = vector.load %arg9[%c0_21, %c0_22] : memref<64x1xf32, #tpu.memory_space<vmem>>, vector<64x1xf32>
    %cst_23 = arith.constant 5.000000e-01 : f32
    %21 = vector.broadcast %cst_23 : f32 to vector<64x1xf32>
    %22 = arith.cmpf ogt, %20, %21 : vector<64x1xf32>
    %23 = vector.broadcast %22 : vector<64x1xi1> to vector<64x64xi1>
    %24 = arith.ori %19, %23 : vector<64x64xi1>
    %25 = arith.select %24, %14, %16 : vector<64x64xi1>, vector<64x64xf32>
    %c0_24 = arith.constant 0 : index
    %c0_25 = arith.constant 0 : index
    %26 = vector.load %arg10[%c0_24, %c0_25] : memref<64x64xf32, #tpu.memory_space<vmem>>, vector<64x64xf32>
    tpu.vector_store %arg10[%c0_24, %c0_25], %25 {strides = array<i32>} : memref<64x64xf32, #tpu.memory_space<vmem>>, vector<64x64xf32>,
    return
  }
  func.func @transform_0(%arg0: i32) -> (i32, i32) {
    %c0_i32 = arith.constant 0 : i32
    %c0_i32_0 = arith.constant 0 : i32
    return %arg0, %c0_i32 : i32, i32
  }
  func.func @transform_1(%arg0: i32) -> (i32, i32) {
    %c0_i32 = arith.constant 0 : i32
    %c0_i32_0 = arith.constant 0 : i32
    return %arg0, %c0_i32 : i32, i32
  }
  func.func @transform_2(%arg0: i32) -> (i32, i32) {
    %c0_i32 = arith.constant 0 : i32
    %c0_i32_0 = arith.constant 0 : i32
    return %arg0, %c0_i32 : i32, i32
  }
  func.func @transform_3(%arg0: i32) -> (i32, i32) {
    %c0_i32 = arith.constant 0 : i32
    %c0_i32_0 = arith.constant 0 : i32
    return %arg0, %c0_i32 : i32, i32
  }
  func.func @transform_4(%arg0: i32) -> (i32, i32) {
    %c0_i32 = arith.constant 0 : i32
    %c0_i32_0 = arith.constant 0 : i32
    %c0_i32_1 = arith.constant 0 : i32
    return %c0_i32, %c0_i32_0 : i32, i32
  }
  func.func @transform_5(%arg0: i32) -> (i32, i32) {
    %c0_i32 = arith.constant 0 : i32
    %c0_i32_0 = arith.constant 0 : i32
    %c0_i32_1 = arith.constant 0 : i32
    return %c0_i32, %c0_i32_0 : i32, i32
  }
  func.func @transform_6(%arg0: i32) -> (i32, i32) {
    %c0_i32 = arith.constant 0 : i32
    %c0_i32_0 = arith.constant 0 : i32
    %c0_i32_1 = arith.constant 0 : i32
    return %c0_i32, %c0_i32_0 : i32, i32
  }
  func.func @transform_7(%arg0: i32) -> (i32, i32) {
    %c0_i32 = arith.constant 0 : i32
    %c0_i32_0 = arith.constant 0 : i32
    %c0_i32_1 = arith.constant 0 : i32
    return %c0_i32, %c0_i32_0 : i32, i32
  }
  func.func @transform_8(%arg0: i32) -> (i32, i32) {
    %c0_i32 = arith.constant 0 : i32
    %c0_i32_0 = arith.constant 0 : i32
    %c0_i32_1 = arith.constant 0 : i32
    return %c0_i32, %c0_i32_0 : i32, i32
  }
  func.func @transform_9(%arg0: i32) -> (i32, i32) {
    %c0_i32 = arith.constant 0 : i32
    %c0_i32_0 = arith.constant 0 : i32
    return %arg0, %c0_i32 : i32, i32
  }
}

</mosaic_0001>

<bundles_post_ra>
// kernel: idwt_haar_2d.1
= control target key start
LH: loop header
LB: loop body
LE: loop exit
PB: predicated region body
PF: predicated region fallthrough
CT: control target
= control target key end

     0   :  { %s2462_s0 = inlined_call_operand.hbm [shape: f32[128,16], index: 0, kind: input, shape index: {}]   ;;  %s2463_s1 = inlined_call_operand.hbm [shape: f32[128,16], index: 1, kind: input, shape index: {}]   ;;  %s2464_s2 = inlined_call_operand.hbm [shape: f32[128,16], index: 2, kind: input, shape index: {}]   ;;  %s2465_s3 = inlined_call_operand.hbm [shape: f32[128,16], index: 3, kind: input, shape index: {}]   ;;  %s2466_s4 = inlined_call_operand.hbm [shape: f32[16,64], index: 4, kind: input, shape index: {}]   ;;  %s2467_s5 = inlined_call_operand.hbm [shape: f32[16,64], index: 5, kind: input, shape index: {}]   ;;  %s2468_s6 = inlined_call_operand.vmem [shape: f32[16,64], index: 6, kind: input, shape index: {}]   ;;  %s2469_s7 = inlined_call_operand.vmem [shape: f32[16,64], index: 7, kind: input, shape index: {}]   ;;  %s2470_s8 = inlined_call_operand.hbm [shape: f32[64,1], index: 8, kind: input, shape index: {}]   ;;  %s2471_s9 = inlined_call_operand.vmem [shape: f32[128,64], index: 9, kind: output, shape index: {}]  }
   0x1   :  { %2490 = sst [smem:[#allocation21_spill]] %s2463_s1 }
   0x2   :  { %2491 = sst [smem:[#allocation22_spill]] %s2466_s4 }
   0x3   :  { %2492 = sst [smem:[#allocation23_spill]] %s2467_s5 }
   0x4   :  { %2493 = sst [smem:[#allocation24_spill]] %s2468_s6 }
   0x5   :  { %2494 = sst [smem:[#allocation25_spill]] %s2469_s7 }
   0x6   :  { %2495 = sst [smem:[#allocation26_spill]] %s2471_s9 }
   0x7   :  { %14 = vsyncpa [#allocation4], 0 }
   0x8   :  { %16 = vsyncpa [#allocation4 + $0x1], 0 }
   0x9   :  { %17 = vsyncpa [#allocation6], 0 }
   0xa   :  { %19 = vsyncpa [#allocation6 + $0x1], 0 }
   0xb   :  { %20 = vsyncpa [#allocation9], 0 }
   0xc   :  { %22 = vsyncpa [#allocation9 + $0x1], 0 }
   0xd   :  { %23 = vsyncpa [#allocation12], 0  ;;  %s1969_s30 = smov 0   ;;  %s1971_s10 = smov 0  }
   0xe   :  { %s1973_s11 = smov 0   ;;  %s1975_s12 = smov 0  }
   0xf LB: > { %s1988_s13 = sadd.s32 4294967295, %s1907_s12   ;;  %s1991_s14 = sadd.s32 1, %s1907_s12   ;;  %s1907_s12 = sphi %s1975_s12, %s2528_s12   ;;  %s1903_s11 = sphi %s1973_s11, %s2532_s11   ;;  %s1899_s10 = sphi %s1971_s10, %s2531_s10   ;;  %s1895_s30 = sphi %s1969_s30, %s2530_s30  }
  0x10   : > { %2496 = sst [smem:[#allocation19_spill]] %s1991_s14  ;;  %s33_s15 = ssub.s32 %s1907_s12, %s1991_s14 }
  0x11   : > { %s36_s16 = sadd.s32 1, %s1903_s11  ;;  %p34_p0 = scmp.eq.s32.totalorder %s33_s15, 0 }
  0x12   : > { %p43_p1 = scmp.ne.s32.totalorder %s1903_s11, %s1899_s10  ;;  %p44_p2 = scmp.eq.s32.totalorder %s1907_s12, 0 }
  0x13   : > { %p49_p3 = scmp.ne.s32.totalorder %s1899_s10, %s1895_s30  ;;  %p2472_p5 = scmp.eq.s32.totalorder %s1988_s13, 0 }
  0x14   : > { %s2001_s17 = scalar_select %p34_p0, %s1903_s11, %s36_s16  }
  0x15   : > { %p2003_p4 = por %p44_p2, %p43_p1  ;;  %p1354_p6 = scmp.ge.s32.totalorder %s1907_s12, 1 }
  0x16   : > { %2497 = sst [smem:[#allocation20_spill]] %s2001_s17  ;;  %p269_p7 = scmp.lt.s32.totalorder %s1907_s12, 3 }
  0x17   : > { %s2498_s18 = scalar_select %p2003_p4, 1, 0 }
  0x18   : > { %p2012_p8 = por %p2472_p5, %p49_p3  ;;  %p2016_p9 = pnand %p1354_p6, %p269_p7 }
  0x19   : > { %s1909_s21 = smov [#allocation10]   ;;  %s1910_s24 = smov [#allocation11]  }
  0x1a   : > { %s2499_s19 = scalar_select %p2012_p8, 1, 0 }
  0x1b   : > { %s2500_s20 = scalar_select %p2016_p9, 1, 0 }
  0x1c   : > { %s281_s22 = sshll.u32 %s1909_s21, 4  ;;  %p1583_p10 = pneg %p2016_p9  ;;  %s282_s22 = int_to_ptr.vmem [resolvable:$true] %s281_s22 }
  0x1d   : > { %s294_s25 = sshll.u32 %s1910_s24, 4  ;;  %s2502_s4 = sld [smem:[#allocation22_spill]]  ;;  %s2029_s25 = int_to_ptr.vmem [resolvable:$true] %s294_s25 }
  0x1e   : > { %p2024_p11 = pnand %p1583_p10, %p2472_p5 }
  0x20   : > { %s2501_s23 = scalar_select %p2024_p11, 1, 0 }
  0x21   : > { %p2039_p0 = pneg %p2024_p11 }
  0x23   : > { %s1653_s28 = scalar_lea.hbm %s2502_s4, 256 }
  0x24   : > { %p1654_p13 = scmp.ne.s32.totalorder %s2502_s4, %s1653_s28  ;;  %p1660_p3 = scmp.lt.u32.totalorder %s1653_s28, %s2502_s4 }
  0x25   : > { %s2503_s15 = scalar_select %p2039_p0, 1, 0 }
  0x26   : > { %p1656_p1 = pnand %p2039_p0, %p1654_p13 }
  0x28   : > { %p1657_p2 = pneg %p1656_p1 }
  0x2a   : > { %p1662_p6 = pnand %p1660_p3, %p1657_p2 }
  0x2c   : > { %1665 = shalt.err (!%p1662_p6)
}
  0x2d   : > { %s1666_s24 = scalar_lea.vmem %s282_s22, 256  ;;  %p1674_p12 = scmp.lt.s32.totalorder %s282_s22, %s282_s22 }
  0x2e   : > { %p1667_p7 = scmp.ne.s32.totalorder %s282_s22, %s1666_s24  ;;  %p1675_p8 = scmp.lt.s32.totalorder %s1666_s24, %s1666_s24 }
  0x30   : > { %p1669_p10 = pnand %p1667_p7, %p2039_p0  ;;  %p1676_p9 = por %p1675_p8, %p1674_p12 }
  0x32   : > { %p1670_p5 = pneg %p1669_p10 }
  0x34   : > { %p1677_p4 = pnand %p1676_p9, %p1670_p5 }
  0x36   : > { %1680 = shalt.err (!%p1677_p4)
}
  0x37   : > { %s2478_s26 = smov 128   ;;  %s2480_s27 = smov 8  }
  0x38   : > { %1586 = dma.hbm_to_vmem [thread:$0]  (!%p2024_p11), %s2502_s4, 256, %s282_s22, [#allocation9], %s2478_s26, %s2478_s26, %s2480_s27  }
  0x39   : > { %s2504_s5 = sld [smem:[#allocation23_spill]] }
  0x3f   : > { %s1681_s21 = scalar_lea.hbm %s2504_s5, 256 }
  0x40   : > { %p1682_p4 = scmp.ne.s32.totalorder %s2504_s5, %s1681_s21  ;;  %p1688_p9 = scmp.lt.u32.totalorder %s1681_s21, %s2504_s5 }
  0x42   : > { %p1684_p5 = pnand %p1682_p4, %p2039_p0 }
  0x44   : > { %p1685_p8 = pneg %p1684_p5 }
  0x46   : > { %p1690_p12 = pnand %p1688_p9, %p1685_p8 }
  0x48   : > { %1693 = shalt.err (!%p1690_p12)
}
  0x49   : > { %s1694_s22 = scalar_lea.vmem %s2029_s25, 256  ;;  %p1702_p3 = scmp.lt.s32.totalorder %s2029_s25, %s2029_s25 }
  0x4a   : > { %p1695_p13 = scmp.ne.s32.totalorder %s2029_s25, %s1694_s22  ;;  %p1703_p6 = scmp.lt.s32.totalorder %s1694_s22, %s1694_s22 }
  0x4c   : > { %p1697_p1 = pnand %p1695_p13, %p2039_p0  ;;  %p1704_p7 = por %p1703_p6, %p1702_p3 }
  0x4e   : > { %p1698_p2 = pneg %p1697_p1 }
  0x50   : > { %p1705_p10 = pnand %p1704_p7, %p1698_p2 }
  0x52   : > { %1708 = shalt.err (!%p1705_p10)
}
  0x53   : > { %1589 = dma.hbm_to_vmem [thread:$0]  (!%p2024_p11), %s2504_s5, 256, %s2029_s25, [#allocation12], %s2478_s26, %s2478_s26, %s2480_s27  }
  0x54   : > { %s2477_s17 = sand.u32 1, %s1903_s11   ;;  %s2086_s28 = sshll.u32 %s1907_s12, 10 }
  0x55   : > { %s2090_s29 = sshll.u32 %s2477_s17, 6  ;;  %p2505_p4 = scmp.ne.s32.totalorder %s2498_s18, 0 }
  0x56   : > { %p2506_p5 = scmp.lt.s32.totalorder %s1907_s12, 2  ;;  %s2482_s16 = sand.u32 1, %s1907_s12  }
  0x57   : > { %s2508_s1 = sld [smem:[#allocation21_spill]]  ;;  %s352_s22 = scalar_lea.vmem [#allocation5], %s2090_s29 }
  0x58   : > { %p2096_p8 = pnand %p2506_p5, %p2505_p4  ;;  %s359_s9 = sshll.u32 %s352_s22, 4  ;;  %s2108_s9 = int_to_ptr.vmem [resolvable:$true] %s359_s9 }
  0x59   : > { %s2112_s18 = scalar_lea.sflag [#allocation6], %s2482_s16 }
  0x5a   : > { %s2507_s30 = scalar_select %p2096_p8, 1, 0 }
  0x5b   : > { %p2118_p12 = pneg %p2096_p8 }
  0x5d   : > { %s2105_s25 = scalar_lea.hbm %s2508_s1, %s2086_s28  ;;  %s1714_s22 = scalar_lea.hbm %s2508_s1, 2048 }
  0x5e   : > { %s1709_s14 = scalar_lea.hbm %s2105_s25, 1024  ;;  %p1715_p2 = scmp.lt.u32.totalorder %s2105_s25, %s2508_s1 }
  0x5f   : > { %p1710_p9 = scmp.ne.s32.totalorder %s2105_s25, %s1709_s14  ;;  %p1716_p3 = scmp.lt.u32.totalorder %s1714_s22, %s1709_s14 }
  0x60   : > { %p1718_p7 = scmp.lt.u32.totalorder %s1709_s14, %s2105_s25 }
  0x61   : > { %p1712_p13 = pnand %p2118_p12, %p1710_p9  ;;  %p1717_p6 = por %p1716_p3, %p1715_p2 }
  0x63   : > { %p1713_p1 = pneg %p1712_p13  ;;  %p1719_p10 = por %p1718_p7, %p1717_p6 }
  0x65   : > { %p1720_p4 = pnand %p1719_p10, %p1713_p1 }
  0x67   : > { %1723 = shalt.err (!%p1720_p4)
}
  0x68   : > { %s1724_s16 = scalar_lea.vmem %s2108_s9, 1024  ;;  %s1913_s21 = smov [#allocation5]  }
  0x69   : > { %p1725_p5 = scmp.ne.s32.totalorder %s2108_s9, %s1724_s16  ;;  %s1729_s24 = sshll.u32 %s1913_s21, 4  ;;  %s1730_s24 = int_to_ptr.vmem [resolvable:$false] %s1729_s24 }
  0x6a   : > { %s1731_s26 = scalar_lea.vmem %s1730_s24, 2048  ;;  %p1732_p11 = scmp.lt.s32.totalorder %s2108_s9, %s1730_s24 }
  0x6b   : > { %p1727_p9 = pnand %p1725_p5, %p2118_p12  ;;  %p1733_p0 = scmp.lt.s32.totalorder %s1731_s26, %s1724_s16 }
  0x6d   : > { %p1728_p13 = pneg %p1727_p9  ;;  %p1734_p2 = por %p1733_p0, %p1732_p11 }
  0x6f   : > { %p1735_p3 = pnand %p1734_p2, %p1728_p13 }
  0x71   : > { %1738 = shalt.err (!%p1735_p3)
}
  0x72   : > { %s2510_s27 = smov 8   ;;  %s2511_s14 = smov 128  }
  0x73   : > { %1599 = dma.hbm_to_vmem [thread:$0]  (!%p2096_p8), %s2105_s25, 1024, %s2108_s9, %s2112_s18, %s2511_s14, %s2511_s14, %s2510_s27  }
  0x74   : > { %s1914_s22 = smov [#allocation13]   ;;  %s2149_s16 = scalar_lea.hbm %s2462_s0, %s2086_s28 }
  0x75   : > { %s313_s21 = sshll.u32 %s1914_s22, 4  ;;  %s1739_s5 = scalar_lea.hbm %s2470_s8, 1024  ;;  %s314_s21 = int_to_ptr.vmem [resolvable:$true] %s313_s21 }
  0x76   : > { %p1740_p11 = scmp.ne.s32.totalorder %s2470_s8, %s1739_s5  ;;  %p2512_p0 = scmp.ne.s32.totalorder %s2503_s15, 0 }
  0x77   : > { %p1746_p7 = scmp.lt.u32.totalorder %s1739_s5, %s2470_s8 }
  0x78   : > { %p1742_p1 = pnand %p1740_p11, %p2512_p0 }
  0x7a   : > { %p1743_p6 = pneg %p1742_p1 }
  0x7c   : > { %p1748_p10 = pnand %p1746_p7, %p1743_p6 }
  0x7e   : > { %1751 = shalt.err (!%p1748_p10)
}
  0x7f   : > { %s1752_s1 = scalar_lea.vmem %s314_s21, 1024  ;;  %p1760_p13 = scmp.lt.s32.totalorder %s314_s21, %s314_s21 }
  0x80   : > { %p1753_p4 = scmp.ne.s32.totalorder %s314_s21, %s1752_s1  ;;  %p1761_p2 = scmp.lt.s32.totalorder %s1752_s1, %s1752_s1 }
  0x82   : > { %p1755_p5 = pnand %p1753_p4, %p2512_p0  ;;  %p1762_p3 = por %p1761_p2, %p1760_p13 }
  0x84   : > { %p1756_p9 = pneg %p1755_p5 }
  0x86   : > { %p1763_p8 = pnand %p1762_p3, %p1756_p9 }
  0x88   : > { %1766 = shalt.err (!%p1763_p8)
}
  0x89   : > { %p2513_p11 = scmp.ne.s32.totalorder %s2501_s23, 0  ;;  %s331_s6 = scalar_lea.vmem [#allocation3], %s2090_s29 }
  0x8a   : > { %s338_s7 = sshll.u32 %s331_s6, 4  ;;  %s2179_s22 = scalar_lea.hbm %s2464_s2, %s2086_s28  ;;  %s2173_s7 = int_to_ptr.vmem [resolvable:$true] %s338_s7 }
  0x8b   : > { %1592 = dma.hbm_to_vmem [thread:$0]  (!%p2513_p11), %s2470_s8, 1024, %s314_s21, [#allocation12], %s2511_s14, %s2511_s14, %s2510_s27  }
  0x8c   : > { %s2514_s24 = sand.u32 1, %s1903_s11   ;;  %s1767_s25 = scalar_lea.hbm %s2149_s16, 1024 }
  0x8d   : > { %s2183_s26 = scalar_lea.sflag [#allocation4], %s2514_s24  ;;  %p1768_p8 = scmp.ne.s32.totalorder %s2149_s16, %s1767_s25 }
  0x8e   : > { %s1772_s21 = scalar_lea.hbm %s2462_s0, 2048  ;;  %p1773_p6 = scmp.lt.u32.totalorder %s2149_s16, %s2462_s0 }
  0x8f   : > { %p1770_p0 = pnand %p1768_p8, %p2118_p12  ;;  %p1774_p7 = scmp.lt.u32.totalorder %s1772_s21, %s1767_s25 }
  0x90   : > { %p1776_p4 = scmp.lt.u32.totalorder %s1767_s25, %s2149_s16 }
  0x91   : > { %p1771_p1 = pneg %p1770_p0  ;;  %p1775_p10 = por %p1774_p7, %p1773_p6 }
  0x93   : > { %p1777_p5 = por %p1776_p4, %p1775_p10 }
  0x95   : > { %p1778_p9 = pnand %p1777_p5, %p1771_p1 }
  0x97   : > { %1781 = shalt.err (!%p1778_p9)
}
  0x98   : > { %s1782_s6 = scalar_lea.vmem %s2173_s7, 1024  ;;  %s1915_s23 = smov [#allocation3]  }
  0x99   : > { %p1783_p13 = scmp.ne.s32.totalorder %s2173_s7, %s1782_s6  ;;  %s1787_s15 = sshll.u32 %s1915_s23, 4  ;;  %s1788_s15 = int_to_ptr.vmem [resolvable:$false] %s1787_s15 }
  0x9a   : > { %s1789_s24 = scalar_lea.vmem %s1788_s15, 2048  ;;  %p1790_p11 = scmp.lt.s32.totalorder %s2173_s7, %s1788_s15 }
  0x9b   : > { %p1785_p2 = pnand %p1783_p13, %p2118_p12  ;;  %p1791_p8 = scmp.lt.s32.totalorder %s1789_s24, %s1782_s6 }
  0x9d   : > { %p1786_p3 = pneg %p1785_p2  ;;  %p1792_p0 = por %p1791_p8, %p1790_p11 }
  0x9f   : > { %p1793_p6 = pnand %p1792_p0, %p1786_p3 }
  0xa1   : > { %1796 = shalt.err (!%p1793_p6)
}
  0xa2   : > { %p2515_p1 = scmp.ne.s32.totalorder %s2507_s30, 0  ;;  %s373_s25 = scalar_lea.vmem [#allocation7], %s2090_s29 }
  0xa3   : > { %s380_s9 = sshll.u32 %s373_s25, 4  ;;  %s2217_s4 = scalar_lea.hbm %s2465_s3, %s2086_s28  ;;  %s2211_s9 = int_to_ptr.vmem [resolvable:$true] %s380_s9 }
  0xa4   : > { %1596 = dma.hbm_to_vmem [thread:$0]  (!%p2515_p1), %s2149_s16, 1024, %s2173_s7, %s2183_s26, %s2511_s14, %s2511_s14, %s2510_s27  }
  0xa5   : > { %s1797_s5 = scalar_lea.hbm %s2179_s22, 1024  ;;  %s1802_s15 = scalar_lea.hbm %s2464_s2, 2048 }
  0xa6   : > { %p1798_p7 = scmp.ne.s32.totalorder %s2179_s22, %s1797_s5  ;;  %p1803_p5 = scmp.lt.u32.totalorder %s2179_s22, %s2464_s2 }
  0xa7   : > { %p1804_p9 = scmp.lt.u32.totalorder %s1802_s15, %s1797_s5  ;;  %p1806_p2 = scmp.lt.u32.totalorder %s1797_s5, %s2179_s22 }
  0xa8   : > { %p1800_p10 = pnand %p1798_p7, %p2118_p12 }
  0xa9   : > { %p1805_p13 = por %p1804_p9, %p1803_p5 }
  0xaa   : > { %p1801_p4 = pneg %p1800_p10 }
  0xab   : > { %p1807_p3 = por %p1806_p2, %p1805_p13 }
  0xad   : > { %p1808_p11 = pnand %p1807_p3, %p1801_p4 }
  0xaf   : > { %1811 = shalt.err (!%p1808_p11)
}
  0xb0   : > { %s1812_s28 = scalar_lea.vmem %s2211_s9, 1024  ;;  %s1916_s7 = smov [#allocation7]  }
  0xb1   : > { %p1813_p8 = scmp.ne.s32.totalorder %s2211_s9, %s1812_s28  ;;  %s1817_s26 = sshll.u32 %s1916_s7, 4  ;;  %s1818_s26 = int_to_ptr.vmem [resolvable:$false] %s1817_s26 }
  0xb2   : > { %s1819_s25 = scalar_lea.vmem %s1818_s26, 2048  ;;  %p1820_p7 = scmp.lt.s32.totalorder %s2211_s9, %s1818_s26 }
  0xb3   : > { %p1815_p0 = pnand %p1813_p8, %p2118_p12  ;;  %p1821_p10 = scmp.lt.s32.totalorder %s1819_s25, %s1812_s28 }
  0xb5   : > { %p1816_p6 = pneg %p1815_p0  ;;  %p1822_p5 = por %p1821_p10, %p1820_p7 }
  0xb7   : > { %p1823_p9 = pnand %p1822_p5, %p1816_p6 }
  0xb9   : > { %1826 = shalt.err (!%p1823_p9)
}
  0xba   : > { %1602 = dma.hbm_to_vmem [thread:$0]  (!%p2515_p1), %s2179_s22, 1024, %s2211_s9, %s2112_s18, %s2511_s14, %s2511_s14, %s2510_s27  }
  0xbb   : > { %s394_s1 = scalar_lea.vmem [#allocation8], %s2090_s29  ;;  %s2516_s5 = sand.u32 1, %s1907_s12  }
  0xbc   : > { %s401_s21 = sshll.u32 %s394_s1, 4  ;;  %s2249_s6 = scalar_lea.sflag [#allocation9], %s2516_s5  ;;  %s2245_s21 = int_to_ptr.vmem [resolvable:$true] %s401_s21 }
  0xbd   : > { %s1827_s23 = scalar_lea.hbm %s2217_s4, 1024  ;;  %s1832_s16 = scalar_lea.hbm %s2465_s3, 2048 }
  0xbe   : > { %p1828_p4 = scmp.ne.s32.totalorder %s2217_s4, %s1827_s23  ;;  %p1833_p3 = scmp.lt.u32.totalorder %s2217_s4, %s2465_s3 }
  0xbf   : > { %p1834_p11 = scmp.lt.u32.totalorder %s1832_s16, %s1827_s23  ;;  %p1836_p0 = scmp.lt.u32.totalorder %s1827_s23, %s2217_s4 }
  0xc0   : > { %p1830_p13 = pnand %p1828_p4, %p2118_p12 }
  0xc1   : > { %p1835_p8 = por %p1834_p11, %p1833_p3 }
  0xc2   : > { %p1831_p2 = pneg %p1830_p13 }
  0xc3   : > { %p1837_p6 = por %p1836_p0, %p1835_p8 }
  0xc5   : > { %p1838_p7 = pnand %p1837_p6, %p1831_p2 }
  0xc7   : > { %1841 = shalt.err (!%p1838_p7)
}
  0xc8   : > { %s1842_s12 = scalar_lea.vmem %s2245_s21, 1024  ;;  %s1917_s29 = smov [#allocation8]  }
  0xc9   : > { %p1843_p10 = scmp.ne.s32.totalorder %s2245_s21, %s1842_s12  ;;  %s1847_s18 = sshll.u32 %s1917_s29, 4  ;;  %s1848_s18 = int_to_ptr.vmem [resolvable:$false] %s1847_s18 }
  0xca   : > { %s1849_s22 = scalar_lea.vmem %s1848_s18, 2048  ;;  %p1850_p4 = scmp.lt.s32.totalorder %s2245_s21, %s1848_s18 }
  0xcb   : > { %p1845_p5 = pnand %p1843_p10, %p2118_p12  ;;  %p1851_p13 = scmp.lt.s32.totalorder %s1849_s22, %s1842_s12 }
  0xcd   : > { %p1846_p9 = pneg %p1845_p5  ;;  %p1852_p3 = por %p1851_p13, %p1850_p4 }
  0xcf   : > { %p1853_p11 = pnand %p1852_p3, %p1846_p9 }
  0xd1   : > { %1856 = shalt.err (!%p1853_p11)
}
  0xd2   : > { %1605 = dma.hbm_to_vmem [thread:$0]  (!%p2515_p1), %s2217_s4, 1024, %s2245_s21, %s2249_s6, %s2511_s14, %s2511_s14, %s2510_s27  }
  0xd3   : > { %p2517_p12 = scmp.ne.s32.totalorder %s2500_s20, 0 }
  0xd4   : > { %s415_s17 = sand.u32 (!%p2517_p12), 1, %s1899_s10   ;;  %p2518_p2 = scmp.ne.s32.totalorder (!%p2517_p12), %s2499_s19, 0 }
  0xd5   : > { %413 = sbr.rel (%p2517_p12) target bundleno = 499 (0x1f3), region = 56  ;;  %s1372_s9 = sshll.u32 (!%p2517_p12), %s415_s17, 6 }
  0xd6   : > { %s416_s26 = scalar_lea.sflag (!%p2517_p12), [#allocation4], %s415_s17  ;;  %s2279_s25 = scalar_lea.vmem (!%p2517_p12), [#allocation3], %s1372_s9 }
  0xdc   : > { %1874 = dma.done.wait (%p2518_p2), %s416_s26, 1024  }
  0xdd   : > { %1876 = vsyncadd (%p2518_p2), %s416_s26, 4294966272  ;;  %s424_s30 = sand.u32 1, %s1988_s13   ;;  %s2286_s27 = scalar_lea.vmem [#allocation5], %s1372_s9 }
  0xde   : > { %s425_s1 = scalar_lea.sflag [#allocation6], %s424_s30 }
  0xdf   : > { %1878 = dma.done.wait (%p2518_p2), %s425_s1, 2048  }
  0xe0   : > { %1880 = vsyncadd (%p2518_p2), %s425_s1, 4294965248  ;;  %s2292_s20 = scalar_lea.vmem [#allocation7], %s1372_s9  ;;  %s443_s14 = scalar_lea.sflag [#allocation9], %s424_s30 }
  0xe1   : > { %s2294_s4 = scalar_lea.vmem [#allocation8], %s1372_s9 }
  0xe2   : > { %1882 = dma.done.wait (%p2518_p2), %s443_s14, 1024  }
  0xe3   : > { %1884 = vsyncadd (%p2518_p2), %s443_s14, 4294966272  ;;  %p2519_p1 = scmp.eq.s32.totalorder %s1988_s13, 0 }
  0xe5   : > { %1886 = dma.done.wait (%p2519_p1), [#allocation9], 256   ;;  %p2520_p8 = pmov %p2519_p1 }
  0xe6   : > { %p2521_p0 = pmov %p2519_p1 }
  0xe7   : > { %1888 = vsyncadd (%p2520_p8), [#allocation9], 4294967040 }
  0xe8   : > { %1890 = dma.done.wait (%p2521_p0), [#allocation12], 1280   ;;  %p2522_p6 = pmov %p2521_p0 }
  0xe9   : > { %v1918_v0 = vmov 0   ;;  %vm538_vm0 = vcmask 130048   ;;  %v536_v1 = vld [vmem:[#allocation11] sm:$0xff]  ;;  %v537_v2 = vld [vmem:[#allocation11 + $0x8] sm:$0xff]  ;;  %s2523_s5 = sld [smem:[#allocation24_spill]]  ;;  %v528_v6 = vld [vmem:[%s2286_s27] sm:$0xff]  ;;  %v1108_v62 = vlaneseq }
  0xea   : > { %1892 = vsyncadd (%p2522_p6), [#allocation12], 4294966016  ;;  %1652 = vset.pattern.permute.xlu1 %v1918_v0  ;;  %1651 = vset.pattern.permute.xlu0 %v1918_v0  ;;  %v1523_v4 = vpack.c.bf16 %v537_v2, %v536_v1  ;;  %v797_v7 = vld [vmem:[%s2292_s20] sm:$0xff]  ;;  %v527_v10 = vld [vmem:[#allocation10 + $0x8] sm:$0xff]  ;;  %s2524_s16 = sld [smem:[#allocation25_spill]]  ;;  %s1379_s12 = sshll.u32 %s1988_s13, 3 }
  0xeb   : > { %1463 = vmatprep.mubr.msk.f32.mxu1 %vm538_vm0, %v528_v6  ;;  %1495 = vmatprep.mubr.msk.f32.mxu0 %vm538_vm0, %v797_v7  ;;  %v526_v9 = vld [vmem:[#allocation10] sm:$0xff]  ;;  %v529_v14 = vld [vmem:[%s2286_s27 + $0x8] sm:$0xff]  ;;  %v530_v17 = vld [vmem:[%s2286_s27 + $0x10] sm:$0xff]  ;;  %p513_p7 = scmp.lt.s32.totalorder %s1379_s12, 15  ;;  %vm1091_vm9 = vcmask 523264   ;;  %s2527_s22 = sld [smem:[#allocation26_spill]] }
  0xec   : > { %1524 = vmatprep.subr.bf16.mxu1 %v1523_v4  ;;  %v1527_v11 = vpack.c.bf16 %v527_v10, %v526_v9  ;;  %v798_v16 = vld [vmem:[%s2292_s20 + $0x8] sm:$0xff]  ;;  %v799_v18 = vld [vmem:[%s2292_s20 + $0x10] sm:$0xff]  ;;  %v531_v19 = vld [vmem:[%s2286_s27 + $0x18] sm:$0xff] }
  0xed   : > { %1526 = vmatpush3.bf16.msra.mxu1 %v1523_v4  ;;  %v800_v20 = vld [vmem:[%s2292_s20 + $0x18] sm:$0xff]  ;;  %v532_v21 = vld [vmem:[%s2286_s27 + $0x20] sm:$0xff]  ;;  %v533_v23 = vld [vmem:[%s2286_s27 + $0x28] sm:$0xff]  ;;  %s2534_s12 = smov (!%p513_p7, %s1379_s12), 15 }
  0xee   : > { %1528 = vmatprep.subr.bf16.mxu1 %v1527_v11  ;;  %v801_v22 = vld [vmem:[%s2292_s20 + $0x20] sm:$0xff]  ;;  %v802_v24 = vld [vmem:[%s2292_s20 + $0x28] sm:$0xff]  ;;  %v534_v25 = vld [vmem:[%s2286_s27 + $0x30] sm:$0xff]  ;;  %s1380_s13 = sshll.u32 %s2534_s12, 3 }
  0xef   : > { %v805_v3 = vld [vmem:[%s2523_s5] sm:$0xff]  ;;  %v806_v5 = vld [vmem:[%s2523_s5 + $0x8] sm:$0xff]  ;;  %v1113_v26 = vld [vmem:[#allocation13 + $0x10] sm:$0xff] }
  0xf0   : > { %v1531_v8 = vpack.c.bf16 %v806_v5, %v805_v3  ;;  %v952_v12 = vld [vmem:[%s2524_s16] sm:$0xff]  ;;  %v953_v13 = vld [vmem:[%s2524_s16 + $0x8] sm:$0xff]  ;;  %1464 = vmatmul.mubr.msk.f32.vlgmr.msra.gmra.mrb[0].mxu1 %vm538_vm0, %v529_v14  ;;  %v803_v28 = vld [vmem:[%s2292_s20 + $0x30] sm:$0xff]  ;;  %vm1121_vm1 = vcmp.gt.f32.partialorder %v1113_v26, 0.5  ;;  %v2395_v5 = vand.u32 127, %v1108_v62 }
  0xf1   : > { %v1535_v15 = vpack.c.bf16 %v953_v13, %v952_v12  ;;  %1530 = vmatpush3.bf16.msra.mxu1 %v1527_v11  ;;  %1466 = vmatprep.mubr.msk.f32.mxu1 %vm538_vm0, %v530_v17  ;;  %v1111_v27 = vld [vmem:[#allocation13] sm:$0xff]  ;;  %v1114_v29 = vld [vmem:[#allocation13 + $0x18] sm:$0xff]  ;;  %v1112_v30 = vld [vmem:[#allocation13 + $0x8] sm:$0xff]  ;;  %v1129_v31 = vsel %vm1121_vm1, 1, %v1918_v0  ;;  %s2411_s17 = scalar_lea.vmem %s2527_s22, %s1380_s13 }
  0xf2   : > { %1532 = vmatprep.subr.bf16.mxu0 %v1531_v8  ;;  %vm1119_vm2 = vcmp.gt.f32.partialorder %v1111_v27, 0.5  ;;  %vm1122_vm3 = vcmp.gt.f32.partialorder %v1114_v29, 0.5  ;;  %v535_v33 = vld [vmem:[%s2286_s27 + $0x38] sm:$0xff]  ;;  %vm1120_vm4 = vcmp.gt.f32.partialorder %v1112_v30, 0.5  ;;  %v1116_v34 = vld [vmem:[#allocation13 + $0x28] sm:$0xff]  ;;  %v518_v36 = vld [vmem:[%s2279_s25] sm:$0xff]  ;;  %1142 = vperm.xlu1 %1652, %v1129_v31  }
  0xf3   : > { %1534 = vmatpush3.bf16.msra.mxu0 %v1531_v8  ;;  %v1127_v32 = vsel %vm1119_vm2, 1, %v1918_v0  ;;  %v804_v35 = vld [vmem:[%s2292_s20 + $0x38] sm:$0xff]  ;;  %v1115_v37 = vld [vmem:[#allocation13 + $0x20] sm:$0xff]  ;;  %v1130_v39 = vsel %vm1122_vm3, 1, %v1918_v0  ;;  %v1128_v40 = vsel %vm1120_vm4, 1, %v1918_v0  ;;  %vm1124_vm5 = vcmp.gt.f32.partialorder %v1116_v34, 0.5 }
  0xf4   : > { %1536 = vmatprep.subr.bf16.mxu0 %v1535_v15  ;;  %1467 = vmatmul.mubr.msk.f32.gmra.mrb[2].mxu1 %vm538_vm0, %v531_v19  ;;  %v944_v38 = vld [vmem:[%s2294_s4] sm:$0xff]  ;;  %v519_v41 = vld [vmem:[%s2279_s25 + $0x8] sm:$0xff]  ;;  %vm1123_vm6 = vcmp.gt.f32.partialorder %v1115_v37, 0.5  ;;  %v1118_v42 = vld [vmem:[#allocation13 + $0x38] sm:$0xff]  ;;  %v1132_v47 = vsel %vm1124_vm5, 1, %v1918_v0  ;;  %vm1110_vm10 = vcmp.lt.s32.totalorder %v2395_v5, 32 }
  0xf5   : > { %1469 = vmatprep.mubr.msk.f32.mxu1 %vm538_vm0, %v532_v21  ;;  %1136 = vperm.xlu0 %1651, %v1127_v32   ;;  %v945_v43 = vld [vmem:[%s2294_s4 + $0x8] sm:$0xff]  ;;  %v520_v44 = vld [vmem:[%s2279_s25 + $0x10] sm:$0xff]  ;;  %v1131_v48 = vsel %vm1123_vm6, 1, %v1918_v0  ;;  %vm1126_vm7 = vcmp.gt.f32.partialorder %v1118_v42, 0.5  ;;  %v521_v49 = vld [vmem:[%s2279_s25 + $0x18] sm:$0xff] }
  0xf6   : > { %1496 = vmatmul.mubr.msk.f32.vlgmr.msra.gmra.mrb[0].mxu0 %vm538_vm0, %v798_v16  ;;  %1145 = vperm.xlu1 %1652, %v1130_v39   ;;  %v1117_v45 = vld [vmem:[#allocation13 + $0x30] sm:$0xff]  ;;  %v947_v50 = vld [vmem:[%s2294_s4 + $0x18] sm:$0xff]  ;;  %v522_v51 = vld [vmem:[%s2279_s25 + $0x20] sm:$0xff]  ;;  %v1134_v53 = vsel %vm1126_vm7, 1, %v1918_v0 }
  0xf7   : > { %1538 = vmatpush3.bf16.msra.mxu0 %v1535_v15  ;;  %1498 = vmatprep.mubr.msk.f32.mxu0 %vm538_vm0, %v799_v18  ;;  %v946_v46 = vld [vmem:[%s2294_s4 + $0x10] sm:$0xff]  ;;  %vm1125_vm8 = vcmp.gt.f32.partialorder %v1117_v45, 0.5  ;;  %v948_v52 = vld [vmem:[%s2294_s4 + $0x20] sm:$0xff]  ;;  %v523_v55 = vld [vmem:[%s2279_s25 + $0x28] sm:$0xff] }
  0xf8   : > { %1470 = vmatmul.mubr.msk.f32.gmra.mrb[4].mxu1 %vm538_vm0, %v533_v23  ;;  %v1133_v54 = vsel %vm1125_vm8, 1, %v1918_v0  ;;  %v949_v56 = vld [vmem:[%s2294_s4 + $0x28] sm:$0xff]  ;;  %v524_v57 = vld [vmem:[%s2279_s25 + $0x30] sm:$0xff]  ;;  %v525_v59 = vld [vmem:[%s2279_s25 + $0x38] sm:$0xff] }
  0xf9   : > { %1472 = vmatprep.mubr.msk.f32.mxu1 %vm538_vm0, %v534_v25  ;;  %1139 = vperm.xlu0 %1651, %v1128_v40   ;;  %v950_v58 = vld [vmem:[%s2294_s4 + $0x30] sm:$0xff]  ;;  %v951_v60 = vld [vmem:[%s2294_s4 + $0x38] sm:$0xff] }
  0xfa   : > { %1499 = vmatmul.mubr.msk.f32.gmra.mrb[2].mxu0 %vm538_vm0, %v800_v20  ;;  %1151 = vperm.xlu1 %1652, %v1132_v47  }
  0xfb   : > { %1501 = vmatprep.mubr.msk.f32.mxu0 %vm538_vm0, %v801_v22 }
  0xfc   : > { %1473 = vmatmul.mubr.msk.f32.gmra.mrb[6].mxu1 %vm538_vm0, %v535_v33 }
  0xfd   : > { %1479 = vmatprep.mubr.msk.f32.mxu1 %vm538_vm0, %v518_v36  ;;  %1148 = vperm.xlu0 %1651, %v1131_v48  }
  0xfe   : > { %1502 = vmatmul.mubr.msk.f32.gmra.mrb[4].mxu0 %vm538_vm0, %v802_v24  ;;  %1157 = vperm.xlu1 %1652, %v1134_v53  }
  0xff   : > { %1504 = vmatprep.mubr.msk.f32.mxu0 %vm538_vm0, %v803_v28 }
 0x100   : > { %1480 = vmatmul.mubr.msk.f32.vlgmr.msra.gmra.mrb[0].mxu1 %vm538_vm0, %v519_v41 }
 0x101   : > { %1482 = vmatprep.mubr.msk.f32.mxu1 %vm538_vm0, %v520_v44  ;;  %1154 = vperm.xlu0 %1651, %v1133_v54  }
 0x102   : > { %1505 = vmatmul.mubr.msk.f32.gmra.mrb[6].mxu0 %vm538_vm0, %v804_v35 }
 0x103   : > { %1511 = vmatprep.mubr.msk.f32.mxu0 %vm538_vm0, %v944_v38 }
 0x104   : > { %1483 = vmatmul.mubr.msk.f32.gmra.mrb[2].mxu1 %vm538_vm0, %v521_v49 }
 0x105   : > { %1485 = vmatprep.mubr.msk.f32.mxu1 %vm538_vm0, %v522_v51 }
 0x106   : > { %1512 = vmatmul.mubr.msk.f32.vlgmr.msra.gmra.mrb[0].mxu0 %vm538_vm0, %v945_v43 }
 0x107   : > { %1514 = vmatprep.mubr.msk.f32.mxu0 %vm538_vm0, %v946_v46 }
 0x108   : > { %1486 = vmatmul.mubr.msk.f32.gmra.mrb[4].mxu1 %vm538_vm0, %v523_v55 }
 0x109   : > { %1488 = vmatprep.mubr.msk.f32.mxu1 %vm538_vm0, %v524_v57 }
 0x10a   : > { %1515 = vmatmul.mubr.msk.f32.gmra.mrb[2].mxu0 %vm538_vm0, %v947_v50 }
 0x10b   : > { %1517 = vmatprep.mubr.msk.f32.mxu0 %vm538_vm0, %v948_v52 }
 0x10c   : > { %1489 = vmatmul.mubr.msk.f32.gmra.mrb[6].mxu1 %vm538_vm0, %v525_v59 }
 0x10e   : > { %1518 = vmatmul.mubr.msk.f32.gmra.mrb[4].mxu0 %vm538_vm0, %v949_v56 }
 0x10f   : > { %1520 = vmatprep.mubr.msk.f32.mxu0 %vm538_vm0, %v950_v58 }
 0x112   : > { %1521 = vmatmul.mubr.msk.f32.gmra.mrb[6].mxu0 %vm538_vm0, %v951_v60 }
 0x171   : > { %v1143_v61 = vpop.permute.xlu1 %1142 }
 0x172   : > { %vm1161_vm13 = vcmp.eq.s32.totalorder %v1143_v61, 1 }
 0x173   : > { %vm1169_vm15 = vmor %vm1110_vm10, %vm1161_vm13 }
 0x174   : > { %v1137_v63 = vpop.permute.xlu0 %1136 }
 0x175   : > { %v1146_v7 = vpop.permute.xlu1 %1145  ;;  %vm1159_vm11 = vcmp.eq.s32.totalorder %v1137_v63, 1 }
 0x176   : > { %vm2404_vm12 = vmor %vm1110_vm10, %vm1159_vm11  ;;  %vm1162_vm0 = vcmp.eq.s32.totalorder %v1146_v7, 1 }
 0x177   : > { %vm1170_vm3 = vmor %vm1110_vm10, %vm1162_vm0 }
 0x178   : > { %v1140_v11 = vpop.permute.xlu0 %1139 }
 0x179   : > { %v1152_v21 = vpop.permute.xlu1 %1151  ;;  %vm1160_vm14 = vcmp.eq.s32.totalorder %v1140_v11, 1 }
 0x17a   : > { %vm1168_vm1 = vmor %vm1110_vm10, %vm1160_vm14  ;;  %vm1164_vm4 = vcmp.eq.s32.totalorder %v1152_v21, 1 }
 0x17b   : > { %vm1172_vm8 = vmor %vm1110_vm10, %vm1164_vm4 }
 0x17c   : > { %v1149_v24 = vpop.permute.xlu0 %1148 }
 0x17d   : > { %vm1163_vm2 = vcmp.eq.s32.totalorder %v1149_v24, 1  ;;  %v1158_v36 = vpop.permute.xlu1 %1157 }
 0x17e   : > { %vm1171_vm5 = vmor %vm1110_vm10, %vm1163_vm2  ;;  %vm1166_vm6 = vcmp.eq.s32.totalorder %v1158_v36, 1 }
 0x17f   : > { %vm1174_vm11 = vmor %vm1110_vm10, %vm1166_vm6 }
 0x180   : > { %v1155_v37 = vpop.permute.xlu0 %1154 }
 0x181   : > { %vm1165_vm7 = vcmp.eq.s32.totalorder %v1155_v37, 1 }
 0x1d3   : > { %v1481_v0 = vpop.f32.mrb[0].mxu1 }
 0x1d4   : > { %v758_v2 = vpop.f32.mrb[1].mxu1 }
 0x1d7   : > { %v1484_v8 = vpop.f32.mrb[2].mxu1 }
 0x1d8   : > { %v768_v10 = vpop.f32.mrb[3].mxu1 }
 0x1d9   : > { %v1513_v1 = vpop.f32.mrb[0].mxu0 }
 0x1da   : > { %v1539_v3 = vadd.f32 %v1513_v1, %v1481_v0  ;;  %v1044_v4 = vpop.f32.mrb[1].mxu0 }
 0x1db   : > { %v1540_v6 = vadd.f32 %v1044_v4, %v758_v2  ;;  %v1487_v15 = vpop.f32.mrb[4].mxu1 }
 0x1dc   : > { %1093 = vst.msk [vmem:[#allocation2 + $0x8] sm:$0xff] %vm1091_vm9, %v1539_v3  ;;  %v778_v17 = vpop.f32.mrb[5].mxu1 }
 0x1dd   : > { %1092 = vst.msk [vmem:[#allocation2] sm:$0xff] %vm1091_vm9, %v1540_v6  ;;  %v1516_v9 = vpop.f32.mrb[2].mxu0 }
 0x1de   : > { %v1541_v12 = vadd.f32 %v1516_v9, %v1484_v8  ;;  %v1054_v13 = vpop.f32.mrb[3].mxu0 }
 0x1df   : > { %v1542_v14 = vadd.f32 %v1054_v13, %v768_v10  ;;  %v1490_v25 = vpop.f32.mrb[6].mxu1 }
 0x1e0   : > { %1095 = vst.msk [vmem:[#allocation2 + $0x18] sm:$0xff] %vm1091_vm9, %v1541_v12  ;;  %v788_v28 = vpop.f32.mrb[7].mxu1 }
 0x1e1   : > { %1094 = vst.msk [vmem:[#allocation2 + $0x10] sm:$0xff] %vm1091_vm9, %v1542_v14  ;;  %v1519_v16 = vpop.f32.mrb[4].mxu0 }
 0x1e2   : > { %v1543_v19 = vadd.f32 %v1519_v16, %v1487_v15  ;;  %v1064_v20 = vpop.f32.mrb[5].mxu0 }
 0x1e3   : > { %v1544_v22 = vadd.f32 %v1064_v20, %v778_v17 }
 0x1e4   : > { %v1100_v23 = vld [vmem:[#allocation2 + $0x1] sm:$0xff]  ;;  %1097 = vst.msk [vmem:[#allocation2 + $0x28] sm:$0xff] %vm1091_vm9, %v1543_v19 }
 0x1e5   : > { %v1175_v26 = vsel %vm2404_vm12, %v1540_v6, %v1100_v23  ;;  %1096 = vst.msk [vmem:[#allocation2 + $0x20] sm:$0xff] %vm1091_vm9, %v1544_v22  ;;  %v1522_v27 = vpop.f32.mrb[6].mxu0  ;;  %vm1173_vm12 = vmor %vm1110_vm10, %vm1165_vm7 }
 0x1e6   : > { %1183 = vst.msk [vmem:[%s2411_s17] sm:$0xff] %vm1091_vm9, %v1175_v26  ;;  %v1545_v29 = vadd.f32 %v1522_v27, %v1490_v25  ;;  %v1074_v30 = vpop.f32.mrb[7].mxu0 }
 0x1e7   : > { %v1546_v31 = vadd.f32 %v1074_v30, %v788_v28 }
 0x1e8   : > { %v1101_v32 = vld [vmem:[#allocation2 + $0x9] sm:$0xff]  ;;  %v1102_v33 = vld [vmem:[#allocation2 + $0x11] sm:$0xff]  ;;  %1099 = vst.msk [vmem:[#allocation2 + $0x38] sm:$0xff] %vm1091_vm9, %v1545_v29 }
 0x1e9   : > { %v1176_v34 = vsel %vm1168_vm1, %v1539_v3, %v1101_v32  ;;  %v1177_v35 = vsel %vm1169_vm15, %v1542_v14, %v1102_v33  ;;  %1098 = vst.msk [vmem:[#allocation2 + $0x30] sm:$0xff] %vm1091_vm9, %v1546_v31 }
 0x1ea   : > { %1184 = vst.msk [vmem:[%s2411_s17 + $0x8] sm:$0xff] %vm1091_vm9, %v1176_v34  ;;  %1185 = vst.msk [vmem:[%s2411_s17 + $0x10] sm:$0xff] %vm1091_vm9, %v1177_v35 }
 0x1ec   : > { %v1103_v38 = vld [vmem:[#allocation2 + $0x19] sm:$0xff]  ;;  %v1104_v39 = vld [vmem:[#allocation2 + $0x21] sm:$0xff] }
 0x1ed   : > { %v1178_v40 = vsel %vm1170_vm3, %v1541_v12, %v1103_v38  ;;  %v1179_v41 = vsel %vm1171_vm5, %v1544_v22, %v1104_v39 }
 0x1ee   : > { %1186 = vst.msk [vmem:[%s2411_s17 + $0x18] sm:$0xff] %vm1091_vm9, %v1178_v40  ;;  %1187 = vst.msk [vmem:[%s2411_s17 + $0x20] sm:$0xff] %vm1091_vm9, %v1179_v41 }
 0x1ef   : > { %v1107_v42 = vld [vmem:[#allocation2 + $0x39] sm:$0xff] }
 0x1f0   : > { %v1182_v43 = vsel %vm1174_vm11, %v1545_v29, %v1107_v42  ;;  %v1105_v44 = vld [vmem:[#allocation2 + $0x29] sm:$0xff]  ;;  %v1106_v45 = vld [vmem:[#allocation2 + $0x31] sm:$0xff] }
 0x1f1   : > { %1190 = vst.msk [vmem:[%s2411_s17 + $0x38] sm:$0xff] %vm1091_vm9, %v1182_v43  ;;  %v1180_v46 = vsel %vm1172_vm8, %v1543_v19, %v1105_v44  ;;  %v1181_v47 = vsel %vm1173_vm12, %v1546_v31, %v1106_v45 }
 0x1f2   : > { %1188 = vst.msk [vmem:[%s2411_s17 + $0x28] sm:$0xff] %vm1091_vm9, %v1180_v46  ;;  %1189 = vst.msk [vmem:[%s2411_s17 + $0x30] sm:$0xff] %vm1091_vm9, %v1181_v47 }
 0x1f3 PF: > { %s2528_s12 = sld [smem:[#allocation19_spill]]  ;;  %s2529_s9 = sld [smem:[#allocation20_spill]] }
 0x1f4   : > { %s2530_s30 = smov %s1899_s10  ;;  %s2531_s10 = smov %s1903_s11 }
 0x1f9   : > { %p26_p10 = scmp.ge.s32.totalorder %s2528_s12, 4   ;;  %s2532_s11 = smov %s2529_s9 }
 0x1fb   :  { %28 = sbr.rel (!%p26_p10) target bundleno = 15 (0xf), region = 145 }
 0x202   :  { %1213 = vsyncpa [#allocation4], 1 }
 0x203   :  { %1215 = vsyncpa [#allocation4 + $0x1], 1 }
 0x204   :  { %1216 = vsyncpa [#allocation6], 1 }
 0x205   :  { %1218 = vsyncpa [#allocation6 + $0x1], 1 }
 0x206   :  { %1219 = vsyncpa [#allocation9], 1 }
 0x207   :  { %1221 = vsyncpa [#allocation9 + $0x1], 1 }
 0x208   :  { %1222 = vsyncpa [#allocation12], 1 }

</bundles_post_ra>
